<compile_context>
chip_gen: v7x
topology: tpu7x:2x2x1
jax: 0.10.0
libtpu: 0.0.40
codegen_flags: <defaults>
</compile_context>

<pallas_src>
import math

import jax
import jax.numpy as jnp
from jax.experimental import pallas as pl
from jax.experimental.pallas import tpu as pltpu


LANE = 128

# --------------------------------------------------------------------------
# Configuration (mirrors InnerNetworkMeta.__init__ arguments)
# --------------------------------------------------------------------------
INPUT_CHANNELS = 4          # points channels
OUTPUT_CHANNELS = 4
LAYERS_MAIN = "32:32"       # hidden sizes of the scene ("inner") network
ACTIVATION_MAIN = "ReLU"    # main-network activation (all but last layer)
LAYERS_META = "32"          # hidden sizes of the meta network
ACTIVATION_META = "ReLU"    # meta-network activation
LATENT_SIZE = 8
ENABLE_PRETRAINING = False

BATCH = 256                 # number of points (small example size)
MAX_TILE_B = 2048           # batch tile cap for very large point counts


def _round_up(x, m):
    return (x + m - 1) // m * m


# --------------------------------------------------------------------------
# Static layer description (same logic as __init__)
# --------------------------------------------------------------------------
def build_layers_descr(input_channels, output_channels, layers_main):
    sizes = list(map(int, layers_main.split(":")))
    descr = []
    activations = []
    num_parameters = 0
    last = input_channels
    max_size = 0

    def add_layer(inc, outc, activ):
        nonlocal num_parameters, max_size
        descr.append(
            (num_parameters,
             num_parameters + inc * outc,
             num_parameters + (inc + 1) * outc,
             inc, outc))
        max_size = max(max_size, inc, outc)
        num_parameters += (inc + 1) * outc
        activations.append(activ)

    for s in sizes:
        add_layer(last, s, True)
        last = s
    add_layer(last, output_channels, False)
    return descr, activations, num_parameters, max_size


# --------------------------------------------------------------------------
# Deterministic parameter init for the meta network (nn.Linear-style init;
# last layer scaled by `bound` / 1/len(layers_descr) exactly as in __init__).
# Weights are stored transposed, i.e. (in, out).
# --------------------------------------------------------------------------
def init_meta_params(key, latent_size, layers_meta, num_parameters, bound, n_descr):
    sizes = list(map(int, layers_meta.split(":")))
    params = []
    last = latent_size
    for s in sizes:
        key, kw, kb = jax.random.split(key, 3)
        lim = 1.0 / math.sqrt(last)
        W = jax.random.uniform(kw, (last, s), jnp.float32, -lim, lim)
        b = jax.random.uniform(kb, (1, s), jnp.float32, -lim, lim)
        params.append((W, b))
        last = s
    key, kw, kb = jax.random.split(key, 3)
    lim = 1.0 / math.sqrt(last)
    W = jax.random.uniform(kw, (last, num_parameters), jnp.float32, -lim, lim) * bound
    b = jax.random.uniform(kb, (1, num_parameters), jnp.float32, -lim, lim) * (1.0 / n_descr)
    params.append((W, b))
    return params


# --------------------------------------------------------------------------
# One-shot XLA prep: meta network + param slicing/packing (runs once per latent)
# --------------------------------------------------------------------------
def meta_forward(latent, meta_params):
    x = latent
    n = len(meta_params)
    for li, (W, b) in enumerate(meta_params):
        x = x @ W + b
        if li < n - 1:
            x = jnp.maximum(x, 0.0)          # ACTIVATION_META == "ReLU"
    return x                                 # (1, num_parameters), f32


def slice_and_pack_params(params, layers_descr):
    """Flat (1, P) params -> per-layer (W[bf16], b[f32]).

    The last layer is zero-padded to a multiple of 128 output lanes so the kernel's
    final matmul writes a lane-dense output block with unmasked stores.
    """
    p = params[0]
    n = len(layers_descr)
    wb = []
    for li, (s, ew, eb, inc, outc) in enumerate(layers_descr):
        W = p[s:ew].reshape(inc, outc)
        b = p[ew:eb].reshape(1, outc)
        if li == n - 1:
            pad = _round_up(outc, LANE) - outc
            if pad:
                W = jnp.pad(W, ((0, 0), (0, pad)))
                b = jnp.pad(b, ((0, 0), (0, pad)))
        wb.append((W.astype(jnp.bfloat16), b.astype(jnp.float32)))
    return wb


# --------------------------------------------------------------------------
# Pallas kernel: inner ("scene") network, tiled over the point batch.
# Matmuls in bf16 with f32 accumulation; bias-add / ReLU stay in f32.
# --------------------------------------------------------------------------
def make_inner_kernel(activations):
    n_layers = len(activations)

    def kernel(*refs):
        x_ref = refs[0]
        out_ref = refs[-1]
        x = x_ref[...]                                       # bf16 (tile_b, Cin)
        for li in range(n_layers):
            w = refs[1 + 2 * li][...]                        # bf16 (in, out)
            b = refs[2 + 2 * li][...]                        # f32  (1, out)
            y = jnp.dot(x, w, preferred_element_type=jnp.float32) + b
            if activations[li]:
                y = jnp.maximum(y, 0.0)                      # ReLU in f32 (v5e friendly)
            x = y.astype(jnp.bfloat16) if li < n_layers - 1 else y
        out_ref[...] = x.astype(out_ref.dtype)               # (tile_b, 128) unmasked stores

    return kernel


def inner_forward(points, weights_biases, activations, output_channels,
                  max_tile_b=MAX_TILE_B):
    B, C = points.shape
    # Large batch tiles amortize per-step overhead; pad so any B is accepted.
    tile_b = _round_up(B, 8) if B <= max_tile_b else max_tile_b
    B_pad = _round_up(B, tile_b)

    x = points.astype(jnp.bfloat16)                          # halve streaming DMA bytes
    if B_pad != B:
        x = jnp.pad(x, ((0, B_pad - B), (0, 0)))

    out_lanes = weights_biases[-1][0].shape[1]               # lane-padded output width

    # NOTE: on v6e with very large B one could add pipeline_mode=pl.Buffered(3) to the
    # points BlockSpec for deeper input buffering; omitted here for portability.
    in_specs = [pl.BlockSpec((tile_b, C), lambda i: (i, 0))]
    flat = []
    for W, b in weights_biases:
        in_specs.append(pl.BlockSpec(W.shape, lambda i: (0, 0)))   # constant block: no re-DMA
        in_specs.append(pl.BlockSpec(b.shape, lambda i: (0, 0)))
        flat += [W, b]

    out = pl.pallas_call(
        make_inner_kernel(activations),
        out_shape=jax.ShapeDtypeStruct((B_pad, out_lanes), jnp.float32),
        grid=(B_pad // tile_b,),
        in_specs=in_specs,
        out_specs=pl.BlockSpec((tile_b, out_lanes), lambda i: (i, 0)),
        compiler_params=pltpu.CompilerParams(dimension_semantics=("parallel",)),
    )(x, *flat)
    return out[:B, :output_channels]


# --------------------------------------------------------------------------
# Full forward = InnerNetworkMeta.forward (jitted end-to-end)
# --------------------------------------------------------------------------
def make_forward(layers_descr, activations, input_channels, output_channels,
                 latent_size, enable_pretraining=False):
    def fwd(latent_variables, points, meta_params, pretrain_parameters=None):
        assert latent_variables.shape == (1, latent_size)
        assert points.ndim == 2 and points.shape[1] == input_channels
        if enable_pretraining:
            params = pretrain_parameters
        else:
            params = meta_forward(latent_variables, meta_params)
        wb = slice_and_pack_params(params, layers_descr)
        return inner_forward(points, wb, activations, output_channels)

    return jax.jit(fwd)


# --------------------------------------------------------------------------
# Pure-JAX references (for correctness check only)
# --------------------------------------------------------------------------
def reference_forward_f32(latent, points, meta_params, layers_descr, activations):
    params = meta_forward(latent, meta_params)
    y = points
    for (s, ew, eb, inc, outc), act in zip(layers_descr, activations):
        W = params[0, s:ew].reshape(inc, outc)
        b = params[0, ew:eb].reshape(outc)
        y = y @ W + b
        if act:
            y = jnp.maximum(y, 0.0)
    return y


def reference_forward_bf16(latent, points, meta_params, layers_descr, activations):
    """Mirrors the kernel's precision: bf16 matmul operands, f32 accumulate/elementwise."""
    params = meta_forward(latent, meta_params)
    y = points.astype(jnp.bfloat16)
    n = len(layers_descr)
    for li, ((s, ew, eb, inc, outc), act) in enumerate(zip(layers_descr, activations)):
        W = params[0, s:ew].reshape(inc, outc).astype(jnp.bfloat16)
        b = params[0, ew:eb].reshape(outc)
        y = jnp.dot(y, W, preferred_element_type=jnp.float32) + b
        if act:
            y = jnp.maximum(y, 0.0)
        if li < n - 1:
            y = y.astype(jnp.bfloat16)
    return y


# TODO(synk): finish_pretraining() is a host-side Adam training loop on the meta-network;
#             it is not a forward kernel and is not ported.

if __name__ == "__main__":
    layers_descr, activations, num_parameters, max_size = build_layers_descr(
        INPUT_CHANNELS, OUTPUT_CHANNELS, LAYERS_MAIN)
    bound = 1.0 / (max_size * len(layers_descr))

    key = jax.random.PRNGKey(0)
    key, k_meta, k_lat, k_pts = jax.random.split(key, 4)

    meta_params = init_meta_params(
        k_meta, LATENT_SIZE, LAYERS_META, num_parameters, bound, len(layers_descr))

    latent = jax.random.normal(k_lat, (1, LATENT_SIZE), jnp.float32)
    points = jax.random.normal(k_pts, (BATCH, INPUT_CHANNELS), jnp.float32)

    forward = make_forward(layers_descr, activations, INPUT_CHANNELS, OUTPUT_CHANNELS,
                           LATENT_SIZE, ENABLE_PRETRAINING)
    out = forward(latent, points, meta_params)
    out = jax.block_until_ready(out)
    assert out.shape == (BATCH, OUTPUT_CHANNELS), out.shape

    # Tight check vs a reference using the same precision recipe (bf16 matmul, f32 acc).
    ref16 = reference_forward_bf16(latent, points, meta_params, layers_descr, activations)
    # Looser check vs the full-f32 reference (bf16 operand rounding, K <= 32).
    ref32 = reference_forward_f32(latent, points, meta_params, layers_descr, activations)

    err16 = float(jnp.max(jnp.abs(out - ref16)))
    err32 = float(jnp.max(jnp.abs(out - ref32)))
    assert jnp.allclose(out, ref16, atol=1e-4, rtol=1e-4), err16
    assert jnp.allclose(out, ref32, atol=2e-2, rtol=2e-2), err32
    print("KERNEL_OK")
</pallas_src>

<mosaic_0001>
module attributes {stable_mosaic.version = 11 : i64} {
  func.func @kernel(%arg0: i32, %arg1: memref<256x4xbf16, #tpu.memory_space<vmem>>, %arg2: memref<4x32xbf16, #tpu.memory_space<vmem>>, %arg3: memref<1x32xf32, #tpu.memory_space<vmem>>, %arg4: memref<32x32xbf16, #tpu.memory_space<vmem>>, %arg5: memref<1x32xf32, #tpu.memory_space<vmem>>, %arg6: memref<32x128xbf16, #tpu.memory_space<vmem>>, %arg7: memref<1x128xf32, #tpu.memory_space<vmem>>, %arg8: memref<256x128xf32, #tpu.memory_space<vmem>>) attributes {dimension_semantics = [#tpu.dimension_semantics<parallel>], iteration_bounds = array<i64: 1>, scalar_prefetch = 0 : i64, scratch_operands = 0 : i64, tpu.core_type = #tpu.core_type<tc>, window_params = [{transform_indices = @transform_0, window_bounds = array<i64: 256, 4>}, {pipeline_mode = #tpu.pipeline_mode<synchronous>, transform_indices = @transform_1, window_bounds = array<i64: 4, 32>}, {pipeline_mode = #tpu.pipeline_mode<synchronous>, transform_indices = @transform_2, window_bounds = array<i64: 1, 32>}, {pipeline_mode = #tpu.pipeline_mode<synchronous>, transform_indices = @transform_3, window_bounds = array<i64: 32, 32>}, {pipeline_mode = #tpu.pipeline_mode<synchronous>, transform_indices = @transform_4, window_bounds = array<i64: 1, 32>}, {pipeline_mode = #tpu.pipeline_mode<synchronous>, transform_indices = @transform_5, window_bounds = array<i64: 32, 128>}, {pipeline_mode = #tpu.pipeline_mode<synchronous>, transform_indices = @transform_6, window_bounds = array<i64: 1, 128>}, {transform_indices = @transform_7, window_bounds = array<i64: 256, 128>}]} {
    %c0 = arith.constant 0 : index
    %c0_0 = arith.constant 0 : index
    %0 = vector.load %arg1[%c0, %c0_0] : memref<256x4xbf16, #tpu.memory_space<vmem>>, vector<256x4xbf16>
    %c0_1 = arith.constant 0 : index
    %c0_2 = arith.constant 0 : index
    %1 = vector.load %arg2[%c0_1, %c0_2] : memref<4x32xbf16, #tpu.memory_space<vmem>>, vector<4x32xbf16>
    %c0_3 = arith.constant 0 : index
    %c0_4 = arith.constant 0 : index
    %2 = vector.load %arg3[%c0_3, %c0_4] : memref<1x32xf32, #tpu.memory_space<vmem>>, vector<1x32xf32>
    %cst = arith.constant dense<0.000000e+00> : vector<256x32xf32>
    %3 = tpu.matmul %0, %1, %cst {dimension_numbers = #tpu.dot_dimension_numbers<[1], [0], [0], [1], [0, 0, 1, 1], [], []>} : vector<256x4xbf16>, vector<4x32xbf16>, vector<256x32xf32> -> vector<256x32xf32>
    %4 = vector.broadcast %2 : vector<1x32xf32> to vector<256x32xf32>
    %5 = arith.addf %3, %4 : vector<256x32xf32>
    %cst_5 = arith.constant 0.000000e+00 : f32
    %6 = vector.broadcast %cst_5 : f32 to vector<256x32xf32>
    %7 = arith.maximumf %5, %6 : vector<256x32xf32>
    %8 = arith.truncf %7 : vector<256x32xf32> to vector<256x32xbf16>
    %c0_6 = arith.constant 0 : index
    %c0_7 = arith.constant 0 : index
    %9 = vector.load %arg4[%c0_6, %c0_7] : memref<32x32xbf16, #tpu.memory_space<vmem>>, vector<32x32xbf16>
    %c0_8 = arith.constant 0 : index
    %c0_9 = arith.constant 0 : index
    %10 = vector.load %arg5[%c0_8, %c0_9] : memref<1x32xf32, #tpu.memory_space<vmem>>, vector<1x32xf32>
    %cst_10 = arith.constant dense<0.000000e+00> : vector<256x32xf32>
    %11 = tpu.matmul %8, %9, %cst_10 {dimension_numbers = #tpu.dot_dimension_numbers<[1], [0], [0], [1], [0, 0, 1, 1], [], []>} : vector<256x32xbf16>, vector<32x32xbf16>, vector<256x32xf32> -> vector<256x32xf32>
    %12 = vector.broadcast %10 : vector<1x32xf32> to vector<256x32xf32>
    %13 = arith.addf %11, %12 : vector<256x32xf32>
    %cst_11 = arith.constant 0.000000e+00 : f32
    %14 = vector.broadcast %cst_11 : f32 to vector<256x32xf32>
    %15 = arith.maximumf %13, %14 : vector<256x32xf32>
    %16 = arith.truncf %15 : vector<256x32xf32> to vector<256x32xbf16>
    %c0_12 = arith.constant 0 : index
    %c0_13 = arith.constant 0 : index
    %17 = vector.load %arg6[%c0_12, %c0_13] : memref<32x128xbf16, #tpu.memory_space<vmem>>, vector<32x128xbf16>
    %c0_14 = arith.constant 0 : index
    %c0_15 = arith.constant 0 : index
    %18 = vector.load %arg7[%c0_14, %c0_15] : memref<1x128xf32, #tpu.memory_space<vmem>>, vector<1x128xf32>
    %cst_16 = arith.constant dense<0.000000e+00> : vector<256x128xf32>
    %19 = tpu.matmul %16, %17, %cst_16 {dimension_numbers = #tpu.dot_dimension_numbers<[1], [0], [0], [1], [0, 0, 1, 1], [], []>} : vector<256x32xbf16>, vector<32x128xbf16>, vector<256x128xf32> -> vector<256x128xf32>
    %20 = vector.broadcast %18 : vector<1x128xf32> to vector<256x128xf32>
    %21 = arith.addf %19, %20 : vector<256x128xf32>
    %c0_17 = arith.constant 0 : index
    %c0_18 = arith.constant 0 : index
    %22 = vector.load %arg8[%c0_17, %c0_18] : memref<256x128xf32, #tpu.memory_space<vmem>>, vector<256x128xf32>
    tpu.vector_store %arg8[%c0_17, %c0_18], %21 {strides = array<i32>} : memref<256x128xf32, #tpu.memory_space<vmem>>, vector<256x128xf32>,
    return
  }
  func.func @transform_0(%arg0: i32) -> (i32, i32) {
    %c0_i32 = arith.constant 0 : i32
    %c0_i32_0 = arith.constant 0 : i32
    return %arg0, %c0_i32 : i32, i32
  }
  func.func @transform_1(%arg0: i32) -> (i32, i32) {
    %c0_i32 = arith.constant 0 : i32
    %c0_i32_0 = arith.constant 0 : i32
    %c0_i32_1 = arith.constant 0 : i32
    return %c0_i32, %c0_i32_0 : i32, i32
  }
  func.func @transform_2(%arg0: i32) -> (i32, i32) {
    %c0_i32 = arith.constant 0 : i32
    %c0_i32_0 = arith.constant 0 : i32
    %c0_i32_1 = arith.constant 0 : i32
    return %c0_i32, %c0_i32_0 : i32, i32
  }
  func.func @transform_3(%arg0: i32) -> (i32, i32) {
    %c0_i32 = arith.constant 0 : i32
    %c0_i32_0 = arith.constant 0 : i32
    %c0_i32_1 = arith.constant 0 : i32
    return %c0_i32, %c0_i32_0 : i32, i32
  }
  func.func @transform_4(%arg0: i32) -> (i32, i32) {
    %c0_i32 = arith.constant 0 : i32
    %c0_i32_0 = arith.constant 0 : i32
    %c0_i32_1 = arith.constant 0 : i32
    return %c0_i32, %c0_i32_0 : i32, i32
  }
  func.func @transform_5(%arg0: i32) -> (i32, i32) {
    %c0_i32 = arith.constant 0 : i32
    %c0_i32_0 = arith.constant 0 : i32
    %c0_i32_1 = arith.constant 0 : i32
    return %c0_i32, %c0_i32_0 : i32, i32
  }
  func.func @transform_6(%arg0: i32) -> (i32, i32) {
    %c0_i32 = arith.constant 0 : i32
    %c0_i32_0 = arith.constant 0 : i32
    %c0_i32_1 = arith.constant 0 : i32
    return %c0_i32, %c0_i32_0 : i32, i32
  }
  func.func @transform_7(%arg0: i32) -> (i32, i32) {
    %c0_i32 = arith.constant 0 : i32
    %c0_i32_0 = arith.constant 0 : i32
    return %arg0, %c0_i32 : i32, i32
  }
}

</mosaic_0001>

<bundles_post_ra>
// kernel: fwd.1
= control target key start
LH: loop header
LB: loop body
LE: loop exit
PB: predicated region body
PF: predicated region fallthrough
CT: control target
= control target key end

     0   :  { %vm196_vm0 = vcmask 1041408   ;;  %vm147_vm1 = vcmask 31744   ;;  %vm432_vm2 = vcmask 261120   ;;  %s1576_s1 = inlined_call_operand.vmem [shape: bf16[4,32], index: 1, kind: input, shape index: {}]   ;;  %s1577_s0 = inlined_call_operand.vmem [shape: bf16[256,4], index: 0, kind: input, shape index: {}]   ;;  %s1578_s3 = inlined_call_operand.vmem [shape: bf16[32,32], index: 3, kind: input, shape index: {}]   ;;  %s1579_s5 = inlined_call_operand.vmem [shape: bf16[32,128], index: 5, kind: input, shape index: {}]   ;;  %s1580_s2 = inlined_call_operand.vmem [shape: f32[1,32], index: 2, kind: input, shape index: {}]   ;;  %s1581_s4 = inlined_call_operand.vmem [shape: f32[1,32], index: 4, kind: input, shape index: {}]   ;;  %s1582_s6 = inlined_call_operand.vmem [shape: f32[1,128], index: 6, kind: input, shape index: {}]   ;;  %s1583_s7 = inlined_call_operand.vmem [shape: f32[256,128], index: 7, kind: output, shape index: {}]  }
   0x1   :  { %v59_v0 = vld [vmem:[%s1576_s1] sm:$0x3]  ;;  %v1193_v3 = vld [vmem:[%s1577_s0 + $0x8] sm:$0xff]   ;;  %v1194_v4 = vld [vmem:[%s1577_s0 + $0x10] sm:$0xff]  }
   0x2   :  { %1190 = vmatprep.subr.msk.bf16.mxu0 %vm196_vm0, %v59_v0  ;;  %v198_v1 = vsel %vm196_vm0, %v59_v0, 0  ;;  %v1192_v2 = vld [vmem:[%s1577_s0] sm:$0xff]   ;;  %1191 = vmatprep.subr.msk.bf16.mxu1 %vm196_vm0, %v59_v0  ;;  %v1195_v5 = vld [vmem:[%s1577_s0 + $0x18] sm:$0xff]   ;;  %v1201_v8 = vld [vmem:[%s1577_s0 + $0x48] sm:$0xff]  }
   0x3   :  { %1083 = vmatpush3.bf16.msra.mxu0 %v198_v1  ;;  %1189 = vmatpush3.bf16.msra.mxu1 %v198_v1  ;;  %v1196_v6 = vld [vmem:[%s1577_s0 + $0x20] sm:$0xff]   ;;  %v1202_v9 = vld [vmem:[%s1577_s0 + $0x50] sm:$0xff]   ;;  %v1197_v10 = vld [vmem:[%s1577_s0 + $0x28] sm:$0xff]  }
   0x4   :  { %1084 = vmatprep.mubr.msk.bf16.mxu0 %vm147_vm1, %v1192_v2  ;;  %v1200_v7 = vld [vmem:[%s1577_s0 + $0x40] sm:$0xff]   ;;  %v1203_v11 = vld [vmem:[%s1577_s0 + $0x58] sm:$0xff]   ;;  %v1198_v14 = vld [vmem:[%s1577_s0 + $0x30] sm:$0xff]  }
   0x5   :  { %1100 = vmatprep.mubr.msk.bf16.mxu1 %vm147_vm1, %v1200_v7  ;;  %v1204_v12 = vld [vmem:[%s1577_s0 + $0x60] sm:$0xff]   ;;  %v1209_v15 = vld [vmem:[%s1578_s3 + $0x8] sm:$0xff]   ;;  %v1199_v17 = vld [vmem:[%s1577_s0 + $0x38] sm:$0xff]  }
   0x6   :  { %1085 = vmatmul.mubr.msk.bf16.vlgmr.msra.gmra.mrb[0].mxu0 %vm147_vm1, %v1193_v3  ;;  %1101 = vmatmul.mubr.msk.bf16.vlgmr.msra.gmra.mrb[0].mxu1 %vm147_vm1, %v1201_v8  ;;  %v1208_v13 = vld [vmem:[%s1578_s3] sm:$0xff]   ;;  %v1205_v16 = vld [vmem:[%s1577_s0 + $0x68] sm:$0xff]   ;;  %v1206_v18 = vld [vmem:[%s1577_s0 + $0x70] sm:$0xff]  }
   0x7   :  { %1088 = vmatprep.mubr.msk.bf16.mxu0 %vm147_vm1, %v1194_v4  ;;  %1104 = vmatprep.mubr.msk.bf16.mxu1 %vm147_vm1, %v1202_v9  ;;  %v1207_v19 = vld [vmem:[%s1577_s0 + $0x78] sm:$0xff]   ;;  %v1210_v20 = vld [vmem:[%s1579_s5] sm:$0xff]   ;;  %v1211_v21 = vld [vmem:[%s1579_s5 + $0x8] sm:$0xff]  }
   0x8   :  { %1116 = vmatprep.subr.bf16.mxu1 %v1208_v13  ;;  %1152 = vmatprep.subr.bf16.mxu0 %v1210_v20  ;;  %v1334_v22 = vld [vmem:[%s1580_s2] ss:$0 sm:$0xff] }
   0x9   :  { %1117 = vmatpush3.bf16.msra.mxu1 %v1208_v13  ;;  %1153 = vmatpush3.bf16.msra.mxu0 %v1210_v20 }
   0xa   :  { %1118 = vmatprep.subr.bf16.mxu1 %v1209_v15  ;;  %1154 = vmatprep.subr.bf16.mxu0 %v1211_v21 }
   0xd   :  { %1119 = vmatpush3.bf16.msra.mxu1 %v1209_v15  ;;  %1155 = vmatpush3.bf16.msra.mxu0 %v1211_v21 }
   0xe   :  { %1089 = vmatmul.mubr.msk.bf16.gmra.mrb[4].mxu0 %vm147_vm1, %v1195_v5  ;;  %1105 = vmatmul.mubr.msk.bf16.gmra.mrb[4].mxu1 %vm147_vm1, %v1203_v11 }
   0xf   :  { %1092 = vmatprep.mubr.msk.bf16.mxu0 %vm147_vm1, %v1196_v6  ;;  %1108 = vmatprep.mubr.msk.bf16.mxu1 %vm147_vm1, %v1204_v12 }
  0x16   :  { %1093 = vmatmul.mubr.msk.bf16.gmra.mrb[8].mxu0 %vm147_vm1, %v1197_v10  ;;  %1109 = vmatmul.mubr.msk.bf16.gmra.mrb[8].mxu1 %vm147_vm1, %v1205_v16 }
  0x17   :  { %1096 = vmatprep.mubr.msk.bf16.mxu0 %vm147_vm1, %v1198_v14  ;;  %1112 = vmatprep.mubr.msk.bf16.mxu1 %vm147_vm1, %v1206_v18 }
  0x1e   :  { %1097 = vmatmul.mubr.msk.bf16.gmra.mrb[12].mxu0 %vm147_vm1, %v1199_v17  ;;  %1113 = vmatmul.mubr.msk.bf16.gmra.mrb[12].mxu1 %vm147_vm1, %v1207_v19 }
  0xd9   :  { %v1086_v23 = vpop.f32.mrb[0].mxu0  ;;  %v1102_v36 = vpop.f32.mrb[0].mxu1 }
  0xda   :  { %v243_v24 = vadd.f32 %v1086_v23, %v1334_v22  ;;  %v234_v25 = vpop.f32.mrb[1].mxu0  ;;  %v307_v39 = vadd.f32 %v1102_v36, %v1334_v22  ;;  %v298_v40 = vpop.f32.mrb[1].mxu1 }
  0xdb   :  { %v235_v26 = vadd.f32 %v1334_v22, %v234_v25  ;;  %v1087_v27 = vpop.f32.mrb[2].mxu0  ;;  %v299_v43 = vadd.f32 %v1334_v22, %v298_v40  ;;  %v1103_v44 = vpop.f32.mrb[2].mxu1 }
  0xdc   :  { %v246_v28 = vadd.f32 %v1087_v27, %v1334_v22  ;;  %v237_v29 = vpop.f32.mrb[3].mxu0  ;;  %v363_v31 = vmax.f32 %v243_v24, 0.0  ;;  %v379_v47 = vmax.f32 %v307_v39, 0.0  ;;  %v310_v48 = vadd.f32 %v1103_v44, %v1334_v22  ;;  %v301_v49 = vpop.f32.mrb[3].mxu1 }
  0xdd   :  { %v238_v30 = vadd.f32 %v1334_v22, %v237_v29  ;;  %v361_v33 = vmax.f32 %v235_v26, 0.0  ;;  %v377_v52 = vmax.f32 %v299_v43, 0.0  ;;  %v302_v53 = vadd.f32 %v1334_v22, %v301_v49 }
  0xde   :  { %v364_v32 = vmax.f32 %v246_v28, 0.0  ;;  %v380_v55 = vmax.f32 %v310_v48, 0.0 }
  0xdf   :  { %v362_v34 = vmax.f32 %v238_v30, 0.0  ;;  %v378_v58 = vmax.f32 %v302_v53, 0.0 }
  0xe0   :  { %v394_v35 = vpack.c.bf16 %v364_v32, %v363_v31  ;;  %v1350_v61 = vpack.c.bf16 %v380_v55, %v379_v47 }
  0xe1   :  { %v393_v37 = vpack.c.bf16 %v362_v34, %v361_v33  ;;  %v1090_v38 = vpop.f32.mrb[4].mxu0  ;;  %v1352_v63 = vpack.c.bf16 %v378_v58, %v377_v52  ;;  %v1106_v0 = vpop.f32.mrb[4].mxu1 }
  0xe2   :  { %v259_v41 = vadd.f32 %v1090_v38, %v1334_v22  ;;  %v250_v42 = vpop.f32.mrb[5].mxu0  ;;  %v323_v3 = vadd.f32 %v1106_v0, %v1334_v22  ;;  %v314_v4 = vpop.f32.mrb[5].mxu1 }
  0xe3   :  { %v251_v45 = vadd.f32 %v1334_v22, %v250_v42  ;;  %v1091_v46 = vpop.f32.mrb[6].mxu0  ;;  %1120 = vmatprep.mubr.msk.bf16.mxu1 %vm432_vm2, %v393_v37  ;;  %v315_v7 = vadd.f32 %v1334_v22, %v314_v4  ;;  %v1107_v8 = vpop.f32.mrb[6].mxu1 }
  0xe4   :  { %v262_v50 = vadd.f32 %v1091_v46, %v1334_v22  ;;  %v253_v51 = vpop.f32.mrb[7].mxu0  ;;  %1121 = vmatmul.mubr.msk.bf16.vlgmr.msra.gmra.mrb[16].mxu1 %vm432_vm2, %v394_v35  ;;  %v367_v56 = vmax.f32 %v259_v41, 0.0  ;;  %v383_v11 = vmax.f32 %v323_v3, 0.0  ;;  %v326_v12 = vadd.f32 %v1107_v8, %v1334_v22  ;;  %v317_v13 = vpop.f32.mrb[7].mxu1 }
  0xe5   :  { %v254_v54 = vadd.f32 %v1334_v22, %v253_v51  ;;  %v365_v59 = vmax.f32 %v251_v45, 0.0  ;;  %v381_v16 = vmax.f32 %v315_v7, 0.0  ;;  %v318_v17 = vadd.f32 %v1334_v22, %v317_v13 }
  0xe6   :  { %v368_v57 = vmax.f32 %v262_v50, 0.0  ;;  %v384_v19 = vmax.f32 %v326_v12, 0.0 }
  0xe7   :  { %v366_v60 = vmax.f32 %v254_v54, 0.0  ;;  %v382_v23 = vmax.f32 %v318_v17, 0.0 }
  0xe8   :  { %v396_v62 = vpack.c.bf16 %v368_v57, %v367_v56  ;;  %v404_v26 = vpack.c.bf16 %v384_v19, %v383_v11 }
  0xe9   :  { %v395_v1 = vpack.c.bf16 %v366_v60, %v365_v59  ;;  %v1094_v2 = vpop.f32.mrb[8].mxu0  ;;  %v403_v28 = vpack.c.bf16 %v382_v23, %v381_v16  ;;  %v1110_v29 = vpop.f32.mrb[8].mxu1 }
  0xea   :  { %v275_v5 = vadd.f32 %v1094_v2, %v1334_v22  ;;  %v266_v6 = vpop.f32.mrb[9].mxu0  ;;  %v339_v32 = vadd.f32 %v1110_v29, %v1334_v22  ;;  %v330_v33 = vpop.f32.mrb[9].mxu1 }
  0xeb   :  { %v267_v9 = vadd.f32 %v1334_v22, %v266_v6  ;;  %v1095_v10 = vpop.f32.mrb[10].mxu0  ;;  %1124 = vmatprep.mubr.msk.bf16.mxu1 %vm432_vm2, %v395_v1  ;;  %v331_v36 = vadd.f32 %v1334_v22, %v330_v33  ;;  %v1111_v37 = vpop.f32.mrb[10].mxu1 }
  0xec   :  { %v278_v14 = vadd.f32 %v1095_v10, %v1334_v22  ;;  %v269_v15 = vpop.f32.mrb[11].mxu0  ;;  %1125 = vmatmul.mubr.msk.bf16.gmra.mrb[20].mxu1 %vm432_vm2, %v396_v62  ;;  %v371_v20 = vmax.f32 %v275_v5, 0.0  ;;  %v387_v40 = vmax.f32 %v339_v32, 0.0  ;;  %v342_v41 = vadd.f32 %v1111_v37, %v1334_v22  ;;  %v333_v42 = vpop.f32.mrb[11].mxu1 }
  0xed   :  { %v270_v18 = vadd.f32 %v1334_v22, %v269_v15  ;;  %v369_v24 = vmax.f32 %v267_v9, 0.0  ;;  %v385_v45 = vmax.f32 %v331_v36, 0.0  ;;  %v334_v46 = vadd.f32 %v1334_v22, %v333_v42 }
  0xee   :  { %v372_v21 = vmax.f32 %v278_v14, 0.0  ;;  %v388_v48 = vmax.f32 %v342_v41, 0.0 }
  0xef   :  { %v370_v25 = vmax.f32 %v270_v18, 0.0  ;;  %v386_v51 = vmax.f32 %v334_v46, 0.0 }
  0xf0   :  { %v398_v27 = vpack.c.bf16 %v372_v21, %v371_v20  ;;  %v406_v54 = vpack.c.bf16 %v388_v48, %v387_v40 }
  0xf1   :  { %v397_v30 = vpack.c.bf16 %v370_v25, %v369_v24  ;;  %v1098_v31 = vpop.f32.mrb[12].mxu0  ;;  %v405_v56 = vpack.c.bf16 %v386_v51, %v385_v45  ;;  %v1114_v57 = vpop.f32.mrb[12].mxu1 }
  0xf2   :  { %v291_v34 = vadd.f32 %v1098_v31, %v1334_v22  ;;  %v282_v35 = vpop.f32.mrb[13].mxu0  ;;  %v355_v59 = vadd.f32 %v1114_v57, %v1334_v22  ;;  %v346_v60 = vpop.f32.mrb[13].mxu1 }
  0xf3   :  { %v283_v38 = vadd.f32 %v1334_v22, %v282_v35  ;;  %v1099_v39 = vpop.f32.mrb[14].mxu0  ;;  %1128 = vmatprep.mubr.msk.bf16.mxu1 %vm432_vm2, %v397_v30  ;;  %v347_v62 = vadd.f32 %v1334_v22, %v346_v60  ;;  %v1115_v0 = vpop.f32.mrb[14].mxu1 }
  0xf4   :  { %v294_v43 = vadd.f32 %v1099_v39, %v1334_v22  ;;  %v285_v44 = vpop.f32.mrb[15].mxu0  ;;  %1129 = vmatmul.mubr.msk.bf16.gmra.mrb[24].mxu1 %vm432_vm2, %v398_v27  ;;  %v375_v49 = vmax.f32 %v291_v34, 0.0  ;;  %v391_v1 = vmax.f32 %v355_v59, 0.0  ;;  %v358_v2 = vadd.f32 %v1115_v0, %v1334_v22  ;;  %v349_v3 = vpop.f32.mrb[15].mxu1 }
  0xf5   :  { %v286_v47 = vadd.f32 %v1334_v22, %v285_v44  ;;  %v373_v52 = vmax.f32 %v283_v38, 0.0  ;;  %v389_v4 = vmax.f32 %v347_v62, 0.0  ;;  %v350_v5 = vadd.f32 %v1334_v22, %v349_v3  ;;  %v1393_v22 = vld [vmem:[%s1581_s4] ss:$0 sm:$0xff] }
  0xf6   :  { %v376_v50 = vmax.f32 %v294_v43, 0.0  ;;  %v392_v6 = vmax.f32 %v358_v2, 0.0 }
  0xf7   :  { %v374_v53 = vmax.f32 %v286_v47, 0.0  ;;  %v390_v7 = vmax.f32 %v350_v5, 0.0 }
  0xf8   :  { %v400_v55 = vpack.c.bf16 %v376_v50, %v375_v49  ;;  %v408_v8 = vpack.c.bf16 %v392_v6, %v391_v1 }
  0xf9   :  { %v399_v58 = vpack.c.bf16 %v374_v53, %v373_v52  ;;  %v407_v9 = vpack.c.bf16 %v390_v7, %v389_v4 }
  0xfb   :  { %1132 = vmatprep.mubr.msk.bf16.mxu1 %vm432_vm2, %v399_v58 }
  0xfc   :  { %1133 = vmatmul.mubr.msk.bf16.gmra.mrb[28].mxu1 %vm432_vm2, %v400_v55 }
  0xfd   :  { %1136 = vmatprep.mubr.msk.bf16.mxu1 %vm432_vm2, %v1352_v63 }
 0x104   :  { %1137 = vmatmul.mubr.msk.bf16.gmra.mrb[32].mxu1 %vm432_vm2, %v1350_v61 }
 0x105   :  { %1140 = vmatprep.mubr.msk.bf16.mxu1 %vm432_vm2, %v403_v28 }
 0x10c   :  { %1141 = vmatmul.mubr.msk.bf16.gmra.mrb[36].mxu1 %vm432_vm2, %v404_v26 }
 0x10d   :  { %1144 = vmatprep.mubr.msk.bf16.mxu1 %vm432_vm2, %v405_v56 }
 0x114   :  { %1145 = vmatmul.mubr.msk.bf16.gmra.mrb[40].mxu1 %vm432_vm2, %v406_v54 }
 0x115   :  { %1148 = vmatprep.mubr.msk.bf16.mxu1 %vm432_vm2, %v407_v9 }
 0x11c   :  { %1149 = vmatmul.mubr.msk.bf16.gmra.mrb[44].mxu1 %vm432_vm2, %v408_v8 }
 0x1b7   :  { %v1122_v63 = vpop.f32.mrb[16].mxu1 }
 0x1b8   :  { %v524_v61 = vadd.f32 %v1122_v63, %v1393_v22  ;;  %v515_v10 = vpop.f32.mrb[17].mxu1 }
 0x1b9   :  { %v516_v11 = vadd.f32 %v1393_v22, %v515_v10  ;;  %v1123_v12 = vpop.f32.mrb[18].mxu1 }
 0x1ba   :  { %v527_v13 = vadd.f32 %v1123_v12, %v1393_v22  ;;  %v518_v14 = vpop.f32.mrb[19].mxu1  ;;  %v644_v16 = vmax.f32 %v524_v61, 0.0 }
 0x1bb   :  { %v519_v15 = vadd.f32 %v1393_v22, %v518_v14  ;;  %v642_v18 = vmax.f32 %v516_v11, 0.0 }
 0x1bc   :  { %v645_v17 = vmax.f32 %v527_v13, 0.0 }
 0x1bd   :  { %v643_v19 = vmax.f32 %v519_v15, 0.0 }
 0x1be   :  { %v675_v20 = vpack.c.bf16 %v645_v17, %v644_v16 }
 0x1bf   :  { %v674_v21 = vpack.c.bf16 %v643_v19, %v642_v18  ;;  %v1126_v23 = vpop.f32.mrb[20].mxu1 }
 0x1c0   :  { %v540_v24 = vadd.f32 %v1126_v23, %v1393_v22  ;;  %v531_v25 = vpop.f32.mrb[21].mxu1 }
 0x1c1   :  { %v532_v26 = vadd.f32 %v1393_v22, %v531_v25  ;;  %v1127_v27 = vpop.f32.mrb[22].mxu1  ;;  %1156 = vmatprep.mubr.msk.bf16.mxu0 %vm432_vm2, %v674_v21 }
 0x1c2   :  { %v543_v28 = vadd.f32 %v1127_v27, %v1393_v22  ;;  %v534_v29 = vpop.f32.mrb[23].mxu1  ;;  %1157 = vmatmul.mubr.msk.bf16.vlgmr.msra.gmra.mrb[16].mxu0 %vm432_vm2, %v675_v20  ;;  %v648_v31 = vmax.f32 %v540_v24, 0.0 }
 0x1c3   :  { %v535_v30 = vadd.f32 %v1393_v22, %v534_v29  ;;  %v646_v33 = vmax.f32 %v532_v26, 0.0 }
 0x1c4   :  { %v649_v32 = vmax.f32 %v543_v28, 0.0 }
 0x1c5   :  { %v647_v34 = vmax.f32 %v535_v30, 0.0 }
 0x1c6   :  { %v677_v35 = vpack.c.bf16 %v649_v32, %v648_v31 }
 0x1c7   :  { %v676_v36 = vpack.c.bf16 %v647_v34, %v646_v33  ;;  %v1130_v37 = vpop.f32.mrb[24].mxu1 }
 0x1c8   :  { %v556_v38 = vadd.f32 %v1130_v37, %v1393_v22  ;;  %v547_v39 = vpop.f32.mrb[25].mxu1 }
 0x1c9   :  { %v548_v40 = vadd.f32 %v1393_v22, %v547_v39  ;;  %v1131_v41 = vpop.f32.mrb[26].mxu1  ;;  %1160 = vmatprep.mubr.msk.bf16.mxu0 %vm432_vm2, %v676_v36 }
 0x1ca   :  { %v559_v42 = vadd.f32 %v1131_v41, %v1393_v22  ;;  %v550_v43 = vpop.f32.mrb[27].mxu1  ;;  %1161 = vmatmul.mubr.msk.bf16.gmra.mrb[20].mxu0 %vm432_vm2, %v677_v35  ;;  %v652_v45 = vmax.f32 %v556_v38, 0.0 }
 0x1cb   :  { %v551_v44 = vadd.f32 %v1393_v22, %v550_v43  ;;  %v650_v47 = vmax.f32 %v548_v40, 0.0 }
 0x1cc   :  { %v653_v46 = vmax.f32 %v559_v42, 0.0 }
 0x1cd   :  { %v651_v48 = vmax.f32 %v551_v44, 0.0 }
 0x1ce   :  { %v679_v49 = vpack.c.bf16 %v653_v46, %v652_v45 }
 0x1cf   :  { %v678_v50 = vpack.c.bf16 %v651_v48, %v650_v47  ;;  %v1134_v51 = vpop.f32.mrb[28].mxu1 }
 0x1d0   :  { %v572_v52 = vadd.f32 %v1134_v51, %v1393_v22  ;;  %v563_v53 = vpop.f32.mrb[29].mxu1 }
 0x1d1   :  { %v564_v54 = vadd.f32 %v1393_v22, %v563_v53  ;;  %v1135_v55 = vpop.f32.mrb[30].mxu1  ;;  %1164 = vmatprep.mubr.msk.bf16.mxu0 %vm432_vm2, %v678_v50 }
 0x1d2   :  { %v575_v56 = vadd.f32 %v1135_v55, %v1393_v22  ;;  %v566_v57 = vpop.f32.mrb[31].mxu1  ;;  %1165 = vmatmul.mubr.msk.bf16.gmra.mrb[24].mxu0 %vm432_vm2, %v679_v49  ;;  %v656_v59 = vmax.f32 %v572_v52, 0.0 }
 0x1d3   :  { %v567_v58 = vadd.f32 %v1393_v22, %v566_v57  ;;  %v654_v62 = vmax.f32 %v564_v54, 0.0 }
 0x1d4   :  { %v657_v60 = vmax.f32 %v575_v56, 0.0 }
 0x1d5   :  { %v655_v0 = vmax.f32 %v567_v58, 0.0  ;;  %v1446_v58 = vld [vmem:[%s1582_s6] ss:$0 sm:$0xff] }
 0x1d6   :  { %v681_v1 = vpack.c.bf16 %v657_v60, %v656_v59 }
 0x1d7   :  { %v680_v2 = vpack.c.bf16 %v655_v0, %v654_v62  ;;  %v1138_v3 = vpop.f32.mrb[32].mxu1 }
 0x1d8   :  { %v588_v4 = vadd.f32 %v1138_v3, %v1393_v22  ;;  %v579_v5 = vpop.f32.mrb[33].mxu1 }
 0x1d9   :  { %v580_v6 = vadd.f32 %v1393_v22, %v579_v5  ;;  %v1139_v7 = vpop.f32.mrb[34].mxu1  ;;  %1168 = vmatprep.mubr.msk.bf16.mxu0 %vm432_vm2, %v680_v2 }
 0x1da   :  { %v591_v8 = vadd.f32 %v1139_v7, %v1393_v22  ;;  %v582_v9 = vpop.f32.mrb[35].mxu1  ;;  %1169 = vmatmul.mubr.msk.bf16.gmra.mrb[28].mxu0 %vm432_vm2, %v681_v1  ;;  %v660_v61 = vmax.f32 %v588_v4, 0.0 }
 0x1db   :  { %v583_v63 = vadd.f32 %v1393_v22, %v582_v9  ;;  %v658_v11 = vmax.f32 %v580_v6, 0.0 }
 0x1dc   :  { %v661_v10 = vmax.f32 %v591_v8, 0.0 }
 0x1dd   :  { %v659_v12 = vmax.f32 %v583_v63, 0.0 }
 0x1de   :  { %v683_v13 = vpack.c.bf16 %v661_v10, %v660_v61 }
 0x1df   :  { %v682_v14 = vpack.c.bf16 %v659_v12, %v658_v11  ;;  %v1142_v15 = vpop.f32.mrb[36].mxu1 }
 0x1e0   :  { %v604_v16 = vadd.f32 %v1142_v15, %v1393_v22  ;;  %v595_v17 = vpop.f32.mrb[37].mxu1 }
 0x1e1   :  { %v596_v18 = vadd.f32 %v1393_v22, %v595_v17  ;;  %v1143_v19 = vpop.f32.mrb[38].mxu1  ;;  %1172 = vmatprep.mubr.msk.bf16.mxu0 %vm432_vm2, %v682_v14 }
 0x1e2   :  { %v607_v20 = vadd.f32 %v1143_v19, %v1393_v22  ;;  %v598_v21 = vpop.f32.mrb[39].mxu1  ;;  %1173 = vmatmul.mubr.msk.bf16.gmra.mrb[32].mxu0 %vm432_vm2, %v683_v13  ;;  %v664_v24 = vmax.f32 %v604_v16, 0.0 }
 0x1e3   :  { %v599_v23 = vadd.f32 %v1393_v22, %v598_v21  ;;  %v662_v26 = vmax.f32 %v596_v18, 0.0 }
 0x1e4   :  { %v665_v25 = vmax.f32 %v607_v20, 0.0 }
 0x1e5   :  { %v663_v27 = vmax.f32 %v599_v23, 0.0 }
 0x1e6   :  { %v685_v28 = vpack.c.bf16 %v665_v25, %v664_v24 }
 0x1e7   :  { %v684_v29 = vpack.c.bf16 %v663_v27, %v662_v26  ;;  %v1146_v30 = vpop.f32.mrb[40].mxu1 }
 0x1e8   :  { %v620_v31 = vadd.f32 %v1146_v30, %v1393_v22  ;;  %v611_v32 = vpop.f32.mrb[41].mxu1 }
 0x1e9   :  { %v612_v33 = vadd.f32 %v1393_v22, %v611_v32  ;;  %v1147_v34 = vpop.f32.mrb[42].mxu1  ;;  %1176 = vmatprep.mubr.msk.bf16.mxu0 %vm432_vm2, %v684_v29 }
 0x1ea   :  { %v623_v35 = vadd.f32 %v1147_v34, %v1393_v22  ;;  %v614_v36 = vpop.f32.mrb[43].mxu1  ;;  %1177 = vmatmul.mubr.msk.bf16.gmra.mrb[36].mxu0 %vm432_vm2, %v685_v28  ;;  %v668_v38 = vmax.f32 %v620_v31, 0.0 }
 0x1eb   :  { %v615_v37 = vadd.f32 %v1393_v22, %v614_v36  ;;  %v666_v40 = vmax.f32 %v612_v33, 0.0 }
 0x1ec   :  { %v669_v39 = vmax.f32 %v623_v35, 0.0 }
 0x1ed   :  { %v667_v41 = vmax.f32 %v615_v37, 0.0 }
 0x1ee   :  { %v687_v42 = vpack.c.bf16 %v669_v39, %v668_v38 }
 0x1ef   :  { %v686_v43 = vpack.c.bf16 %v667_v41, %v666_v40  ;;  %v1150_v44 = vpop.f32.mrb[44].mxu1 }
 0x1f0   :  { %v636_v45 = vadd.f32 %v1150_v44, %v1393_v22  ;;  %v627_v46 = vpop.f32.mrb[45].mxu1 }
 0x1f1   :  { %v628_v47 = vadd.f32 %v1393_v22, %v627_v46  ;;  %v1151_v48 = vpop.f32.mrb[46].mxu1  ;;  %1180 = vmatprep.mubr.msk.bf16.mxu0 %vm432_vm2, %v686_v43 }
 0x1f2   :  { %v639_v49 = vadd.f32 %v1151_v48, %v1393_v22  ;;  %v630_v50 = vpop.f32.mrb[47].mxu1  ;;  %1181 = vmatmul.mubr.msk.bf16.gmra.mrb[40].mxu0 %vm432_vm2, %v687_v42  ;;  %v672_v52 = vmax.f32 %v636_v45, 0.0 }
 0x1f3   :  { %v631_v51 = vadd.f32 %v1393_v22, %v630_v50  ;;  %v670_v54 = vmax.f32 %v628_v47, 0.0 }
 0x1f4   :  { %v673_v53 = vmax.f32 %v639_v49, 0.0 }
 0x1f5   :  { %v671_v55 = vmax.f32 %v631_v51, 0.0 }
 0x1f6   :  { %v689_v56 = vpack.c.bf16 %v673_v53, %v672_v52 }
 0x1f7   :  { %v688_v57 = vpack.c.bf16 %v671_v55, %v670_v54 }
 0x1f9   :  { %1184 = vmatprep.mubr.msk.bf16.mxu0 %vm432_vm2, %v688_v57 }
 0x1fa   :  { %1185 = vmatmul.mubr.msk.bf16.gmra.mrb[44].mxu0 %vm432_vm2, %v689_v56 }
 0x295   :  { %v1158_v59 = vpop.f32.mrb[16].mxu0 }
 0x296   :  { %v804_v60 = vadd.f32 %v1158_v59, %v1446_v58  ;;  %v795_v62 = vpop.f32.mrb[17].mxu0 }
 0x297   :  { %v796_v22 = vadd.f32 %v1446_v58, %v795_v62  ;;  %v1159_v0 = vpop.f32.mrb[18].mxu0 }
 0x298   :  { %924 = vst [vmem:[%s1583_s7 + $0x10] sm:$0xff] %v804_v60  ;;  %v807_v1 = vadd.f32 %v1159_v0, %v1446_v58  ;;  %v798_v2 = vpop.f32.mrb[19].mxu0 }
 0x299   :  { %922 = vst [vmem:[%s1583_s7] sm:$0xff] %v796_v22  ;;  %v799_v3 = vadd.f32 %v1446_v58, %v798_v2 }
 0x29a   :  { %925 = vst [vmem:[%s1583_s7 + $0x18] sm:$0xff] %v807_v1 }
 0x29b   :  { %923 = vst [vmem:[%s1583_s7 + $0x8] sm:$0xff] %v799_v3 }
 0x29d   :  { %v1162_v4 = vpop.f32.mrb[20].mxu0 }
 0x29e   :  { %v820_v5 = vadd.f32 %v1162_v4, %v1446_v58  ;;  %v811_v6 = vpop.f32.mrb[21].mxu0 }
 0x29f   :  { %v812_v7 = vadd.f32 %v1446_v58, %v811_v6  ;;  %v1163_v8 = vpop.f32.mrb[22].mxu0 }
 0x2a0   :  { %928 = vst [vmem:[%s1583_s7 + $0x30] sm:$0xff] %v820_v5  ;;  %v823_v9 = vadd.f32 %v1163_v8, %v1446_v58  ;;  %v814_v63 = vpop.f32.mrb[23].mxu0 }
 0x2a1   :  { %926 = vst [vmem:[%s1583_s7 + $0x20] sm:$0xff] %v812_v7  ;;  %v815_v61 = vadd.f32 %v1446_v58, %v814_v63 }
 0x2a2   :  { %929 = vst [vmem:[%s1583_s7 + $0x38] sm:$0xff] %v823_v9 }
 0x2a3   :  { %927 = vst [vmem:[%s1583_s7 + $0x28] sm:$0xff] %v815_v61 }
 0x2a5   :  { %v1166_v10 = vpop.f32.mrb[24].mxu0 }
 0x2a6   :  { %v836_v11 = vadd.f32 %v1166_v10, %v1446_v58  ;;  %v827_v12 = vpop.f32.mrb[25].mxu0 }
 0x2a7   :  { %v828_v13 = vadd.f32 %v1446_v58, %v827_v12  ;;  %v1167_v14 = vpop.f32.mrb[26].mxu0 }
 0x2a8   :  { %932 = vst [vmem:[%s1583_s7 + $0x50] sm:$0xff] %v836_v11  ;;  %v839_v15 = vadd.f32 %v1167_v14, %v1446_v58  ;;  %v830_v16 = vpop.f32.mrb[27].mxu0 }
 0x2a9   :  { %930 = vst [vmem:[%s1583_s7 + $0x40] sm:$0xff] %v828_v13  ;;  %v831_v17 = vadd.f32 %v1446_v58, %v830_v16 }
 0x2aa   :  { %933 = vst [vmem:[%s1583_s7 + $0x58] sm:$0xff] %v839_v15 }
 0x2ab   :  { %931 = vst [vmem:[%s1583_s7 + $0x48] sm:$0xff] %v831_v17 }
 0x2ad   :  { %v1170_v18 = vpop.f32.mrb[28].mxu0 }
 0x2ae   :  { %v852_v19 = vadd.f32 %v1170_v18, %v1446_v58  ;;  %v843_v20 = vpop.f32.mrb[29].mxu0 }
 0x2af   :  { %v844_v21 = vadd.f32 %v1446_v58, %v843_v20  ;;  %v1171_v23 = vpop.f32.mrb[30].mxu0 }
 0x2b0   :  { %936 = vst [vmem:[%s1583_s7 + $0x70] sm:$0xff] %v852_v19  ;;  %v855_v24 = vadd.f32 %v1171_v23, %v1446_v58  ;;  %v846_v25 = vpop.f32.mrb[31].mxu0 }
 0x2b1   :  { %934 = vst [vmem:[%s1583_s7 + $0x60] sm:$0xff] %v844_v21  ;;  %v847_v26 = vadd.f32 %v1446_v58, %v846_v25 }
 0x2b2   :  { %937 = vst [vmem:[%s1583_s7 + $0x78] sm:$0xff] %v855_v24 }
 0x2b3   :  { %935 = vst [vmem:[%s1583_s7 + $0x68] sm:$0xff] %v847_v26 }
 0x2b5   :  { %v1174_v27 = vpop.f32.mrb[32].mxu0 }
 0x2b6   :  { %v868_v28 = vadd.f32 %v1174_v27, %v1446_v58  ;;  %v859_v29 = vpop.f32.mrb[33].mxu0 }
 0x2b7   :  { %v860_v30 = vadd.f32 %v1446_v58, %v859_v29  ;;  %v1175_v31 = vpop.f32.mrb[34].mxu0 }
 0x2b8   :  { %940 = vst [vmem:[%s1583_s7 + $0x90] sm:$0xff] %v868_v28  ;;  %v871_v32 = vadd.f32 %v1175_v31, %v1446_v58  ;;  %v862_v33 = vpop.f32.mrb[35].mxu0 }
 0x2b9   :  { %938 = vst [vmem:[%s1583_s7 + $0x80] sm:$0xff] %v860_v30  ;;  %v863_v34 = vadd.f32 %v1446_v58, %v862_v33 }
 0x2ba   :  { %941 = vst [vmem:[%s1583_s7 + $0x98] sm:$0xff] %v871_v32 }
 0x2bb   :  { %939 = vst [vmem:[%s1583_s7 + $0x88] sm:$0xff] %v863_v34 }
 0x2bd   :  { %v1178_v35 = vpop.f32.mrb[36].mxu0 }
 0x2be   :  { %v884_v36 = vadd.f32 %v1178_v35, %v1446_v58  ;;  %v875_v37 = vpop.f32.mrb[37].mxu0 }
 0x2bf   :  { %v876_v38 = vadd.f32 %v1446_v58, %v875_v37  ;;  %v1179_v39 = vpop.f32.mrb[38].mxu0 }
 0x2c0   :  { %944 = vst [vmem:[%s1583_s7 + $0xb0] sm:$0xff] %v884_v36  ;;  %v887_v40 = vadd.f32 %v1179_v39, %v1446_v58  ;;  %v878_v41 = vpop.f32.mrb[39].mxu0 }
 0x2c1   :  { %942 = vst [vmem:[%s1583_s7 + $0xa0] sm:$0xff] %v876_v38  ;;  %v879_v42 = vadd.f32 %v1446_v58, %v878_v41 }
 0x2c2   :  { %945 = vst [vmem:[%s1583_s7 + $0xb8] sm:$0xff] %v887_v40 }
 0x2c3   :  { %943 = vst [vmem:[%s1583_s7 + $0xa8] sm:$0xff] %v879_v42 }
 0x2c5   :  { %v1182_v43 = vpop.f32.mrb[40].mxu0 }
 0x2c6   :  { %v900_v44 = vadd.f32 %v1182_v43, %v1446_v58  ;;  %v891_v45 = vpop.f32.mrb[41].mxu0 }
 0x2c7   :  { %v892_v46 = vadd.f32 %v1446_v58, %v891_v45  ;;  %v1183_v47 = vpop.f32.mrb[42].mxu0 }
 0x2c8   :  { %948 = vst [vmem:[%s1583_s7 + $0xd0] sm:$0xff] %v900_v44  ;;  %v903_v48 = vadd.f32 %v1183_v47, %v1446_v58  ;;  %v894_v49 = vpop.f32.mrb[43].mxu0 }
 0x2c9   :  { %946 = vst [vmem:[%s1583_s7 + $0xc0] sm:$0xff] %v892_v46  ;;  %v895_v50 = vadd.f32 %v1446_v58, %v894_v49 }
 0x2ca   :  { %949 = vst [vmem:[%s1583_s7 + $0xd8] sm:$0xff] %v903_v48 }
 0x2cb   :  { %947 = vst [vmem:[%s1583_s7 + $0xc8] sm:$0xff] %v895_v50 }
 0x2cd   :  { %v1186_v51 = vpop.f32.mrb[44].mxu0 }
 0x2ce   :  { %v916_v52 = vadd.f32 %v1186_v51, %v1446_v58  ;;  %v907_v53 = vpop.f32.mrb[45].mxu0 }
 0x2cf   :  { %v908_v54 = vadd.f32 %v1446_v58, %v907_v53  ;;  %v1187_v55 = vpop.f32.mrb[46].mxu0 }
 0x2d0   :  { %952 = vst [vmem:[%s1583_s7 + $0xf0] sm:$0xff] %v916_v52  ;;  %v919_v56 = vadd.f32 %v1187_v55, %v1446_v58  ;;  %v910_v57 = vpop.f32.mrb[47].mxu0 }
 0x2d1   :  { %950 = vst [vmem:[%s1583_s7 + $0xe0] sm:$0xff] %v908_v54  ;;  %v911_v59 = vadd.f32 %v1446_v58, %v910_v57 }
 0x2d2   :  { %953 = vst [vmem:[%s1583_s7 + $0xf8] sm:$0xff] %v919_v56 }
 0x2d3   :  { %951 = vst [vmem:[%s1583_s7 + $0xe8] sm:$0xff] %v911_v59 }

</bundles_post_ra>
